<compile_context>
chip_gen: v6e
topology: v6e:2x2x1
jax: 0.10.0
libtpu: 0.0.40
codegen_flags: <defaults>
</compile_context>

<pallas_src>
import functools

import jax
import jax.numpy as jnp
from jax.experimental import pallas as pl
from jax.experimental.pallas import tpu as pltpu


# ------------------------------ kernel ---------------------------------------
def _pool_sum_kernel(x_ref, sum_ref, acc_ref, *, hw, ragged):
    """Grid = (row_tiles, spatial_tiles); the spatial axis is the reduction.

    x_ref  : (TR, TL)  tile of the (B*Cin, H*W) view of x
    sum_ref: (TR, 1)   per-row spatial sum, written on the last spatial tile
    acc_ref: (TR, 1)   f32 running sum, resident across spatial tiles
    """
    t = pl.program_id(1)

    @pl.when(t == 0)
    def _init():
        acc_ref[...] = jnp.zeros_like(acc_ref)

    xv = x_ref[...].astype(jnp.float32)
    if ragged:
        # Mask lanes past the true H*W: the final spatial block is partial and
        # its out-of-bounds lanes are unspecified on TPU (replaces jnp.pad).
        tl = x_ref.shape[-1]
        lane = jax.lax.broadcasted_iota(jnp.int32, x_ref.shape, 1) + t * tl
        xv = jnp.where(lane < hw, xv, 0.0)

    # Streaming global sum: VALU adds per vreg + one cross-lane (XLU) reduce
    # per tile, both hidden under the HBM DMAs.
    acc_ref[...] += jnp.sum(xv, axis=-1, keepdims=True)

    @pl.when(t == pl.num_programs(1) - 1)
    def _store():
        sum_ref[...] = acc_ref[...]


# ------------------------------ tiling ----------------------------------------
def _choose_tiles(n_rows, hw, itemsize, block_budget_bytes=8 * 1024 * 1024):
    """Pick (row_tile, lane_tile) for the (n_rows, hw) streaming reduction.

    lane_tile: multiple of 128, capped at the 128-padded spatial size, grown
      toward block_budget_bytes (HBM-bandwidth bound -> big DMAs).
    row_tile : multiple of 8 (full sublane use) when n_rows >= 8, grown further
      when the spatial axis alone cannot fill the budget; n_rows otherwise.
    Neither tile has to divide the array: ragged tails are handled in-kernel
    (lane mask) or land in discarded output padding (rows).
    """
    hw128 = pl.cdiv(hw, 128) * 128
    tr = 8 if n_rows >= 8 else n_rows
    lane_cap = max(128, (block_budget_bytes // (tr * itemsize)) // 128 * 128)
    tl = min(hw128, lane_cap)
    if n_rows >= 8:
        row_cap = max(8, (block_budget_bytes // (tl * itemsize)) // 8 * 8)
        tr = min(row_cap, (n_rows // 8) * 8)
    return tr, tl


# ------------------------------ wrapper ---------------------------------------
def attention2d(x_nchw, w1, b1, w2, b2):
    """x_nchw: (B, Cin, H, W) (PyTorch layout) -> (B, K) softmax attention.

    w1: (Cin, K) fc1 weight (matmul-ready), b1: (K,), w2: (K, K), b2: (K,).
    """
    B, Cin, H, W = x_nchw.shape
    hw = H * W
    n_rows = B * Cin

    # Free view of contiguous NCHW: one row per (sample, channel).
    x2 = x_nchw.reshape(n_rows, hw)
    tr, tl = _choose_tiles(n_rows, hw, x2.dtype.itemsize)
    ragged = (hw % tl) != 0

    kernel = functools.partial(_pool_sum_kernel, hw=hw, ragged=ragged)
    sums = pl.pallas_call(
        kernel,
        grid=(pl.cdiv(n_rows, tr), pl.cdiv(hw, tl)),
        in_specs=[pl.BlockSpec((tr, tl), lambda r, t: (r, t))],
        out_specs=pl.BlockSpec((tr, 1), lambda r, t: (r, 0)),
        out_shape=jax.ShapeDtypeStruct((n_rows, 1), jnp.float32),
        scratch_shapes=[pltpu.VMEM((tr, 1), jnp.float32)],
        compiler_params=pltpu.CompilerParams(
            dimension_semantics=("parallel", "arbitrary"),
            # <=8 MiB blocks -> <=16 MiB double-buffered input; 48 MiB fits
            # v7x's 64 MiB VMEM and leaves ample room on v5e/v6e.
            vmem_limit_bytes=48 * 1024 * 1024,
        ),
    )(x2)

    # Tiny per-sample epilogue (K=4) in plain XLA, per the performance review:
    # keeps the Pallas kernel a pure streaming reduction; identical numerics.
    pooled = sums.reshape(B, Cin) * jnp.float32(1.0 / hw)      # global avg pool
    h = jnp.maximum(pooled @ w1 + b1, 0.0)                     # fc1 + ReLU
    logits = h @ w2 + b2                                       # fc2
    return jax.nn.softmax(logits, axis=1)                      # softmax over K


# ------------------------------ reference -------------------------------------
def _attention2d_ref(x_nchw, w1, b1, w2, b2):
    pooled = jnp.mean(x_nchw.astype(jnp.float32), axis=(2, 3))
    h = jnp.maximum(pooled @ w1 + b1, 0.0)
    logits = h @ w2 + b2
    return jax.nn.softmax(logits, axis=1)


# --------------------------------- main ----------------------------------------
if __name__ == "__main__":
    key = jax.random.PRNGKey(0)
    kx, k1, k2, k3, k4, kx2 = jax.random.split(key, 6)

    B, Cin, H, W, K = 2, 4, 16, 16, 4
    # PyTorch-style NCHW input
    x = jax.random.normal(kx, (B, Cin, H, W), dtype=jnp.float32)
    # fc1: Conv2d(Cin, K, 1) stored matmul-ready as (Cin, K); fc2: (K, K)
    w1 = 0.1 * jax.random.normal(k1, (Cin, K), dtype=jnp.float32)
    b1 = 0.1 * jax.random.normal(k2, (K,), dtype=jnp.float32)
    w2 = 0.1 * jax.random.normal(k3, (K, K), dtype=jnp.float32)
    b2 = 0.1 * jax.random.normal(k4, (K,), dtype=jnp.float32)

    att = jax.block_until_ready(attention2d(x, w1, b1, w2, b2))
    ref = _attention2d_ref(x, w1, b1, w2, b2)
    assert att.shape == (B, K)
    assert bool(jnp.all(jnp.isfinite(att)))
    assert bool(jnp.allclose(jnp.sum(att, axis=1), 1.0, atol=1e-5))
    assert bool(jnp.allclose(att, ref, atol=1e-5, rtol=1e-4))

    # Ragged spatial size (H*W not a multiple of 128) exercises the in-kernel
    # tail mask that replaced the old wrapper-side jnp.pad.
    xr = jax.random.normal(kx2, (B, Cin, 10, 10), dtype=jnp.float32)
    att_r = jax.block_until_ready(attention2d(xr, w1, b1, w2, b2))
    ref_r = _attention2d_ref(xr, w1, b1, w2, b2)
    assert bool(jnp.allclose(att_r, ref_r, atol=1e-5, rtol=1e-4))

    print("KERNEL_OK")
</pallas_src>

<mosaic_0001>
module attributes {stable_mosaic.version = 11 : i64} {
  func.func @_pool_sum_kernel(%arg0: i32, %arg1: i32, %arg2: memref<8x256xf32, #tpu.memory_space<vmem>>, %arg3: memref<8x1xf32, #tpu.memory_space<vmem>>, %arg4: memref<8x1xf32, #tpu.memory_space<vmem>>) attributes {dimension_semantics = [#tpu.dimension_semantics<parallel>, #tpu.dimension_semantics<arbitrary>], iteration_bounds = array<i64: 1, 1>, scalar_prefetch = 0 : i64, scratch_operands = 1 : i64, tpu.core_type = #tpu.core_type<tc>, window_params = [{transform_indices = @transform_0, window_bounds = array<i64: 8, 256>}, {transform_indices = @transform_1, window_bounds = array<i64: 8, 1>}]} {
    %c0_i32 = arith.constant 0 : i32
    %0 = arith.cmpi eq, %arg1, %c0_i32 : i32
    %1 = arith.extui %0 : i1 to i32
    %c0_i32_0 = arith.constant 0 : i32
    %2 = arith.cmpi ne, %1, %c0_i32_0 : i32
    scf.if %2 {
      %cst_8 = arith.constant 0.000000e+00 : f32
      %12 = vector.broadcast %cst_8 : f32 to vector<8x1xf32>
      %c0_9 = arith.constant 0 : index
      %c0_10 = arith.constant 0 : index
      %13 = vector.load %arg4[%c0_9, %c0_10] : memref<8x1xf32, #tpu.memory_space<vmem>>, vector<8x1xf32>
      tpu.vector_store %arg4[%c0_9, %c0_10], %12 {strides = array<i32>} : memref<8x1xf32, #tpu.memory_space<vmem>>, vector<8x1xf32>,
    } else {
    }
    %c0 = arith.constant 0 : index
    %c0_1 = arith.constant 0 : index
    %3 = vector.load %arg2[%c0, %c0_1] : memref<8x256xf32, #tpu.memory_space<vmem>>, vector<8x256xf32>
    %c0_2 = arith.constant 0 : index
    %c0_3 = arith.constant 0 : index
    %4 = vector.load %arg4[%c0_2, %c0_3] : memref<8x1xf32, #tpu.memory_space<vmem>>, vector<8x1xf32>
    %cst = arith.constant dense<0.000000e+00> : vector<8xf32>
    %5 = vector.multi_reduction <add>, %3, %cst [1] : vector<8x256xf32> to vector<8xf32>
    %6 = vector.shape_cast %5 : vector<8xf32> to vector<8x1xf32>
    %7 = arith.addf %4, %6 : vector<8x1xf32>
    %c0_4 = arith.constant 0 : index
    %c0_5 = arith.constant 0 : index
    %8 = vector.load %arg4[%c0_4, %c0_5] : memref<8x1xf32, #tpu.memory_space<vmem>>, vector<8x1xf32>
    tpu.vector_store %arg4[%c0_4, %c0_5], %7 {strides = array<i32>} : memref<8x1xf32, #tpu.memory_space<vmem>>, vector<8x1xf32>,
    %c0_i32_6 = arith.constant 0 : i32
    %9 = arith.cmpi eq, %arg1, %c0_i32_6 : i32
    %10 = arith.extui %9 : i1 to i32
    %c0_i32_7 = arith.constant 0 : i32
    %11 = arith.cmpi ne, %10, %c0_i32_7 : i32
    scf.if %11 {
      %c0_8 = arith.constant 0 : index
      %c0_9 = arith.constant 0 : index
      %12 = vector.load %arg4[%c0_8, %c0_9] : memref<8x1xf32, #tpu.memory_space<vmem>>, vector<8x1xf32>
      %c0_10 = arith.constant 0 : index
      %c0_11 = arith.constant 0 : index
      %13 = vector.load %arg3[%c0_10, %c0_11] : memref<8x1xf32, #tpu.memory_space<vmem>>, vector<8x1xf32>
      tpu.vector_store %arg3[%c0_10, %c0_11], %12 {strides = array<i32>} : memref<8x1xf32, #tpu.memory_space<vmem>>, vector<8x1xf32>,
    } else {
    }
    return
  }
  func.func @transform_0(%arg0: i32, %arg1: i32) -> (i32, i32) {
    %c0_i32 = arith.constant 0 : i32
    return %arg0, %arg1 : i32, i32
  }
  func.func @transform_1(%arg0: i32, %arg1: i32) -> (i32, i32) {
    %c0_i32 = arith.constant 0 : i32
    %c0_i32_0 = arith.constant 0 : i32
    return %arg0, %c0_i32 : i32, i32
  }
}

</mosaic_0001>

<bundles_post_ra>
// kernel: tpu_custom_call.1
= control target key start
LH: loop header
LB: loop body
LE: loop exit
PB: predicated region body
PF: predicated region fallthrough
CT: control target
= control target key end

     0   :  { %6 = vsyncpa [#allocation4], 0  ;;  %s69_s6 = smov [#allocation3]   ;;  %s87_s0 = inlined_call_operand.hbm [shape: f32[8,256], index: 0, kind: input, shape index: {}]   ;;  %s88_s1 = inlined_call_operand.vmem [shape: f32[8,1], index: 1, kind: output, shape index: {}]  }
   0x1   :  { %s13_s7 = sshll.u32 %s69_s6, 4  ;;  %s14_s7 = int_to_ptr.vmem [resolvable:$true] %s13_s7 }
   0x2   :  { %s55_s8 = scalar_lea.vmem %s14_s7, 256  ;;  %p60_p1 = scmp.lt.s32.totalorder %s14_s7, %s14_s7 }
   0x3   :  { %p56_p0 = scmp.ne.s32.totalorder %s14_s7, %s55_s8  ;;  %p61_p2 = scmp.lt.s32.totalorder %s55_s8, %s55_s8 }
   0x5   :  { %p62_p3 = por %p61_p2, %p60_p1 }
   0x7   :  { %p63_p4 = pnand %p62_p3, %p56_p0 }
   0x9   :  { %66 = shalt.err (!%p63_p4)
}
   0xa   :  { %16 = dma.hbm_to_vmem [thread:$0]  %s87_s0, 256, %s14_s7, [#allocation4]  }
   0xb   :  { %67 = dma.done.wait [#allocation4], 256  }
   0xc   :  { %68 = vsyncadd [#allocation4], 4294967040  ;;  %vm24_vm0 = vcmask 7168   ;;  %v70_v0 = vmov 0.0   ;;  %v26_v1 = vld [vmem:[#allocation3] sm:$0xff]  ;;  %v27_v2 = vld [vmem:[#allocation3 + $0x8] sm:$0xff] }
   0xd   :  { %25 = vst.msk [vmem:[#allocation2] sm:$0xff] %vm24_vm0, %v70_v0  ;;  %v29_v3 = vadd.f32 %v27_v2, %v26_v1 }
   0xf   :  { %30 = vadd.xlane.f32.xlu0 %v29_v3 }
  0x14   :  { %v28_v4 = vld [vmem:[#allocation2] sm:$0xff] }
  0x98   :  { %v31_v5 = vpop.xlane.xlu0 %30 }
  0x99   :  { %v32_v6 = vadd.f32 %v31_v5, %v28_v4 }
  0x9b   :  { %34 = vst.msk [vmem:[#allocation2] sm:$0xff] %vm24_vm0, %v32_v6 }
  0xa2   :  { %v38_v7 = vld [vmem:[#allocation2] sm:$0xff] }
  0xa3   :  { %39 = vst.msk [vmem:[%s88_s1] sm:$0xff] %vm24_vm0, %v38_v7 }
  0xa4   :  { %44 = vsyncpa [#allocation4], 1 }

</bundles_post_ra>
